<compile_context>
chip_gen: v5e
topology: v5e:2x2
jax: 0.10.0
libtpu: 0.0.40
codegen_flags: <defaults>
</compile_context>

<pallas_src>
import jax
import jax.numpy as jnp
from jax import lax
from jax.experimental import pallas as pl
from jax.experimental.pallas import tpu as pltpu


# ----------------------------------------------------------------------------
# Pallas kernel: fused [3x3 conv (im2col matmul) + bias + ReLU + block-diag
# 1x1 conv + bias] for ALL heads of one stack, spatial-on-lanes layout.
# ----------------------------------------------------------------------------
def _fused_heads_kernel(cols_ref, w1_ref, b1_ref, w2_ref, b2_ref, o_ref):
    # cols_ref: (1, K9, tHW)   bf16  im2col block (K9 = 9*Cin), spatial on lanes
    # w1_ref  : (Cmid, K9)     bf16  packed 3x3 weights for all heads (row-concat)
    # b1_ref  : (Cmid, 1)      f32
    # w2_ref  : (Cout, Cmid)   bf16  block-diagonal 1x1 weights (Cout padded to 8)
    # b2_ref  : (Cout, 1)      f32
    # o_ref   : (1, Cout, tHW) f32
    cols = cols_ref[0]                                     # (K9, tHW) bf16
    # Single K=9*Cin matmul on the MXU, f32 accumulation, N=tHW full lanes.
    h = jnp.dot(w1_ref[...], cols, preferred_element_type=jnp.float32)
    h = jnp.maximum(h + b1_ref[...], 0.0)                  # bias + ReLU (f32)
    # Block-diagonal 1x1 conv for all heads at once.
    out = jnp.dot(w2_ref[...], h.astype(w2_ref.dtype),
                  preferred_element_type=jnp.float32)
    o_ref[...] = jnp.expand_dims(out + b2_ref[...], 0)


def _choose_hw_tile(hw, max_tile=2048):
    """Largest lane tile (multiple of 128) <= max_tile that divides H*W."""
    if hw <= max_tile or hw % 128 != 0:
        return hw
    for t in range(max_tile, 127, -128):
        if hw % t == 0:
            return t
    return hw


def fused_heads_forward(cols, w1p, b1, w2, b2):
    """cols: (N, 9*Cin, H*W) bf16; returns (N, Cout_pad, H*W) f32."""
    N, K9, HW = cols.shape
    Cmid = w1p.shape[0]
    Cout = w2.shape[0]
    thw = _choose_hw_tile(HW)
    grid = (N, HW // thw)

    return pl.pallas_call(
        _fused_heads_kernel,
        out_shape=jax.ShapeDtypeStruct((N, Cout, HW), jnp.float32),
        grid_spec=pltpu.PrefetchScalarGridSpec(
            num_scalar_prefetch=0,
            grid=grid,
            in_specs=[
                pl.BlockSpec((1, K9, thw), lambda n, t: (n, 0, t)),
                pl.BlockSpec((Cmid, K9), lambda n, t: (0, 0)),
                pl.BlockSpec((Cmid, 1), lambda n, t: (0, 0)),
                pl.BlockSpec((Cout, Cmid), lambda n, t: (0, 0)),
                pl.BlockSpec((Cout, 1), lambda n, t: (0, 0)),
            ],
            out_specs=pl.BlockSpec((1, Cout, thw), lambda n, t: (n, 0, t)),
        ),
        compiler_params=pltpu.CompilerParams(
            dimension_semantics=("parallel", "parallel"),
            vmem_limit_bytes=32 * 1024 * 1024,
        ),
    )(cols, w1p, b1, w2, b2)


# ----------------------------------------------------------------------------
# Wrapper-side glue: im2col (done once per stack, not per head) + weight packing
# ----------------------------------------------------------------------------
def _im2col_3x3_nchw(x_nchw):
    """(N, C, H, W) -> (N, 9*C, H*W); row index = (ky*3+kx)*C + c."""
    N, C, H, W = x_nchw.shape
    xp = jnp.pad(x_nchw, ((0, 0), (0, 0), (1, 1), (1, 1)))
    cols = [xp[:, :, ky:ky + H, kx:kx + W].reshape(N, C, H * W)
            for ky in range(3) for kx in range(3)]
    return jnp.concatenate(cols, axis=1)


def _pack_w3x3(w_oihw):
    """(Cmid, Cin, 3, 3) -> (Cmid, 9*Cin); column index = (ky*3+kx)*Cin + ci."""
    cmid, cin = w_oihw.shape[0], w_oihw.shape[1]
    return jnp.transpose(w_oihw, (0, 2, 3, 1)).reshape(cmid, 9 * cin)


# ----------------------------------------------------------------------------
# Python-side model mirroring BaseModel's __init__ / forward control flow
# ----------------------------------------------------------------------------
class Opt:
    head_kernel = 3
    head_DCN = False
    prior_bias = -4.6
    model_output_list = False
    sch_track = False
    sch_eval = False
    kmf_layer_out = False


class BaseModelPallas:
    def __init__(self, heads, head_convs, num_stacks, last_channel, opt=None):
        head_kernel = 3 if (opt is None or opt.head_kernel == 3) else opt.head_kernel
        assert head_kernel == 3, "only kernel=3 heads implemented"
        self.opt = opt
        self.num_stacks = num_stacks
        self.heads = heads
        self.params = {}
        self._packed_cache = {}

        key = jax.random.PRNGKey(0)
        for head in self.heads:
            classes = self.heads[head]
            head_conv = head_convs[head]
            # TODO(synk): only single-hidden-layer heads implemented (spec allows up to 4).
            assert len(head_conv) == 1, "only single-hidden-layer heads built here"
            cmid = head_conv[0]
            key, k1, k2, k3 = jax.random.split(key, 4)
            # conv3x3 weights (OIHW) + bias, 1x1 out-conv weights (Cout, Cmid) + bias
            w1 = jax.random.normal(k1, (cmid, last_channel, 3, 3), jnp.float32) * 0.1
            w2 = jax.random.normal(k2, (classes, cmid), jnp.float32) * 0.1
            if 'hm' in head:
                # fc[-1].bias.data.fill_(opt.prior_bias); conv bias keeps its init
                b1 = jax.random.normal(k3, (cmid,), jnp.float32) * 0.01
                b2 = jnp.full((classes,), opt.prior_bias, jnp.float32)
            else:
                # fill_fc_weights zeros every Conv2d bias in the Sequential
                b1 = jnp.zeros((cmid,), jnp.float32)
                b2 = jnp.zeros((classes,), jnp.float32)
            # NOTE: BatchNorm2d `bn` is only inserted when opt.head_DCN is True,
            # so it is intentionally absent here.
            self.params[head] = (w1, b1, w2, b2)

    # Build (and cache) the fused/packed parameters for a group of heads.
    def _get_packed(self, head_tuple):
        if head_tuple in self._packed_cache:
            return self._packed_cache[head_tuple]
        w1_list, b1_list, w2_list, b2_list = [], [], [], []
        out_slices = {}
        off_mid, off_out = 0, 0
        for head in head_tuple:
            w1, b1, w2, b2 = self.params[head]
            cm, co = w1.shape[0], w2.shape[0]
            w1_list.append(_pack_w3x3(w1))
            b1_list.append(b1)
            w2_list.append((off_out, off_mid, w2))
            b2_list.append(b2)
            out_slices[head] = (off_out, co)
            off_mid += cm
            off_out += co
        cmid_tot, cout_tot = off_mid, off_out
        cout_pad = max(8, -(-cout_tot // 8) * 8)           # sublane-align output rows

        W1 = jnp.concatenate(w1_list, axis=0).astype(jnp.bfloat16)      # (Cmid, 9*Cin)
        B1 = jnp.concatenate(b1_list, axis=0).reshape(cmid_tot, 1).astype(jnp.float32)
        W2 = jnp.zeros((cout_pad, cmid_tot), jnp.float32)
        for ro, co_, w2 in w2_list:
            W2 = W2.at[ro:ro + w2.shape[0], co_:co_ + w2.shape[1]].set(w2)
        W2 = W2.astype(jnp.bfloat16)
        B2 = jnp.zeros((cout_pad, 1), jnp.float32)
        B2 = B2.at[:cout_tot, 0].set(jnp.concatenate(b2_list, axis=0))

        packed = dict(w1=W1, b1=B1, w2=W2, b2=B2, out_slices=out_slices)
        self._packed_cache[head_tuple] = packed
        return packed

    # Identity backbone: returns num_stacks copies of the input as features.
    # TODO(synk): img2feats is abstract (NotImplementedError) in the PyTorch base.
    def img2feats(self, x_nchw):
        return [x_nchw for _ in range(self.num_stacks)]

    def _run_fused_heads(self, head_tuple, feat_nchw):
        pk = self._get_packed(head_tuple)
        N, C, H, W = feat_nchw.shape
        # im2col + bf16 cast once per (stack, source feature) — not per head.
        cols = _im2col_3x3_nchw(feat_nchw.astype(jnp.float32)).astype(jnp.bfloat16)
        out = fused_heads_forward(cols, pk['w1'], pk['b1'], pk['w2'], pk['b2'])
        results = {}
        for head, (off, cnt) in pk['out_slices'].items():
            # (N, Cout_h, H*W) -> NCHW directly (spatial already minor).
            results[head] = out[:, off:off + cnt, :].reshape(N, cnt, H, W)
        return results

    def forward(self, x, pre_img=None, pre_hm=None, kmf_att=None):
        pre_feats = None
        if pre_img is not None and (self.opt.sch_track and (not self.opt.sch_eval)):
            feats = self.img2feats(x)
            pre_feats = self.img2feats(pre_img)
        elif not self.opt.sch_track and (pre_hm is not None or pre_img is not None
                                         or kmf_att is not None):
            # TODO(synk): imgpre2feats is abstract; fall back to identity backbone on x.
            feats = self.img2feats(x)
        else:
            feats = self.img2feats(x)

        def uses_pre(head):
            return ('sch_weight' in head) and (not self.opt.sch_eval)

        main_heads = tuple(h for h in self.heads if not uses_pre(h))
        pre_heads = tuple(h for h in self.heads if uses_pre(h))

        out = []
        for s in range(self.num_stacks):
            results = {}
            if main_heads:
                results.update(self._run_fused_heads(main_heads, feats[s]))
            if pre_heads:
                assert pre_feats is not None
                results.update(self._run_fused_heads(pre_heads, pre_feats[s]))
            if self.opt.model_output_list:
                out.append([results[h] for h in sorted(self.heads)])
            else:
                out.append({h: results[h] for h in self.heads})
        return out


# ----------------------------------------------------------------------------
# Plain-JAX reference (mirrors the kernel's bf16 operand / f32 accumulation)
# ----------------------------------------------------------------------------
def _ref_head(x_nchw, w1_oihw, b1, w2_oc, b2):
    xb = x_nchw.astype(jnp.bfloat16)
    w1b = w1_oihw.astype(jnp.bfloat16)
    y = lax.conv_general_dilated(xb, w1b, window_strides=(1, 1),
                                 padding=((1, 1), (1, 1)),
                                 dimension_numbers=('NCHW', 'OIHW', 'NCHW'),
                                 preferred_element_type=jnp.float32)
    y = y + b1[None, :, None, None]
    y = jnp.maximum(y, 0.0).astype(jnp.bfloat16)
    w2b = w2_oc.astype(jnp.bfloat16)[:, :, None, None]     # (Cout, Cmid, 1, 1)
    z = lax.conv_general_dilated(y, w2b, window_strides=(1, 1), padding='VALID',
                                 dimension_numbers=('NCHW', 'OIHW', 'NCHW'),
                                 preferred_element_type=jnp.float32)
    return z + b2[None, :, None, None]


if __name__ == "__main__":
    # Small synthetic config: 3 heads on a last_channel=4 feature map.
    heads = {"hm": 2, "wh": 2, "reg": 2}
    head_convs = {"hm": [32], "wh": [32], "reg": [32]}
    num_stacks = 1
    last_channel = 4
    opt = Opt()

    model = BaseModelPallas(heads, head_convs, num_stacks, last_channel, opt)

    key = jax.random.PRNGKey(0)
    x = jax.random.normal(key, (2, 4, 16, 16), dtype=jnp.float32)  # NCHW

    out = model.forward(x)
    jax.block_until_ready(out)

    # Verify against plain-JAX conv reference (same bf16 quantization).
    ok = True
    max_err = 0.0
    for head in heads:
        w1, b1, w2, b2 = model.params[head]
        ref = _ref_head(x, w1, b1, w2, b2)
        got = out[0][head]
        err = float(jnp.max(jnp.abs(got - ref)))
        max_err = max(max_err, err)
        if not jnp.allclose(got, ref, atol=5e-3, rtol=5e-3):
            ok = False
    assert ok, f"Pallas fused-head output mismatch vs reference (max abs err {max_err})"

    print("KERNEL_OK")
</pallas_src>

<mosaic_0001>
module attributes {stable_mosaic.version = 11 : i64} {
  func.func @_fused_heads_kernel(%arg0: i32, %arg1: i32, %arg2: memref<1x36x256xbf16, #tpu.memory_space<vmem>>, %arg3: memref<96x36xbf16, #tpu.memory_space<vmem>>, %arg4: memref<96x1xf32, #tpu.memory_space<vmem>>, %arg5: memref<8x96xbf16, #tpu.memory_space<vmem>>, %arg6: memref<8x1xf32, #tpu.memory_space<vmem>>, %arg7: memref<1x8x256xf32, #tpu.memory_space<vmem>>) attributes {dimension_semantics = [#tpu.dimension_semantics<parallel>, #tpu.dimension_semantics<parallel>], iteration_bounds = array<i64: 2, 1>, scalar_prefetch = 0 : i64, scratch_operands = 0 : i64, tpu.core_type = #tpu.core_type<tc>, window_params = [{transform_indices = @transform_0, window_bounds = array<i64: 1, 36, 256>}, {pipeline_mode = #tpu.pipeline_mode<synchronous>, transform_indices = @transform_1, window_bounds = array<i64: 96, 36>}, {pipeline_mode = #tpu.pipeline_mode<synchronous>, transform_indices = @transform_2, window_bounds = array<i64: 96, 1>}, {pipeline_mode = #tpu.pipeline_mode<synchronous>, transform_indices = @transform_3, window_bounds = array<i64: 8, 96>}, {pipeline_mode = #tpu.pipeline_mode<synchronous>, transform_indices = @transform_4, window_bounds = array<i64: 8, 1>}, {transform_indices = @transform_5, window_bounds = array<i64: 1, 8, 256>}]} {
    %c0 = arith.constant 0 : index
    %c0_0 = arith.constant 0 : index
    %c0_1 = arith.constant 0 : index
    %0 = vector.load %arg2[%c0, %c0_0, %c0_1] : memref<1x36x256xbf16, #tpu.memory_space<vmem>>, vector<1x36x256xbf16>
    %1 = vector.shape_cast %0 : vector<1x36x256xbf16> to vector<36x256xbf16>
    %c0_2 = arith.constant 0 : index
    %c0_3 = arith.constant 0 : index
    %2 = vector.load %arg3[%c0_2, %c0_3] : memref<96x36xbf16, #tpu.memory_space<vmem>>, vector<96x36xbf16>
    %cst = arith.constant dense<0.000000e+00> : vector<96x256xf32>
    %3 = tpu.matmul %2, %1, %cst {dimension_numbers = #tpu.dot_dimension_numbers<[1], [0], [0], [1], [0, 0, 1, 1], [], []>} : vector<96x36xbf16>, vector<36x256xbf16>, vector<96x256xf32> -> vector<96x256xf32>
    %c0_4 = arith.constant 0 : index
    %c0_5 = arith.constant 0 : index
    %4 = vector.load %arg4[%c0_4, %c0_5] : memref<96x1xf32, #tpu.memory_space<vmem>>, vector<96x1xf32>
    %5 = vector.broadcast %4 : vector<96x1xf32> to vector<96x256xf32>
    %6 = arith.addf %3, %5 : vector<96x256xf32>
    %cst_6 = arith.constant 0.000000e+00 : f32
    %7 = vector.broadcast %cst_6 : f32 to vector<96x256xf32>
    %8 = arith.maximumf %6, %7 : vector<96x256xf32>
    %c0_7 = arith.constant 0 : index
    %c0_8 = arith.constant 0 : index
    %9 = vector.load %arg5[%c0_7, %c0_8] : memref<8x96xbf16, #tpu.memory_space<vmem>>, vector<8x96xbf16>
    %10 = arith.truncf %8 : vector<96x256xf32> to vector<96x256xbf16>
    %cst_9 = arith.constant dense<0.000000e+00> : vector<8x256xf32>
    %11 = tpu.matmul %9, %10, %cst_9 {dimension_numbers = #tpu.dot_dimension_numbers<[1], [0], [0], [1], [0, 0, 1, 1], [], []>} : vector<8x96xbf16>, vector<96x256xbf16>, vector<8x256xf32> -> vector<8x256xf32>
    %c0_10 = arith.constant 0 : index
    %c0_11 = arith.constant 0 : index
    %12 = vector.load %arg6[%c0_10, %c0_11] : memref<8x1xf32, #tpu.memory_space<vmem>>, vector<8x1xf32>
    %13 = vector.broadcast %12 : vector<8x1xf32> to vector<8x256xf32>
    %14 = arith.addf %11, %13 : vector<8x256xf32>
    %15 = vector.shape_cast %14 : vector<8x256xf32> to vector<1x8x256xf32>
    %c0_12 = arith.constant 0 : index
    %c0_13 = arith.constant 0 : index
    %c0_14 = arith.constant 0 : index
    %16 = vector.load %arg7[%c0_12, %c0_13, %c0_14] : memref<1x8x256xf32, #tpu.memory_space<vmem>>, vector<1x8x256xf32>
    tpu.vector_store %arg7[%c0_12, %c0_13, %c0_14], %15 {strides = array<i32>} : memref<1x8x256xf32, #tpu.memory_space<vmem>>, vector<1x8x256xf32>,
    return
  }
  func.func @transform_0(%arg0: i32, %arg1: i32) -> (i32, i32, i32) {
    %c0_i32 = arith.constant 0 : i32
    %c0_i32_0 = arith.constant 0 : i32
    return %arg0, %c0_i32, %arg1 : i32, i32, i32
  }
  func.func @transform_1(%arg0: i32, %arg1: i32) -> (i32, i32) {
    %c0_i32 = arith.constant 0 : i32
    %c0_i32_0 = arith.constant 0 : i32
    %c0_i32_1 = arith.constant 0 : i32
    return %c0_i32, %c0_i32_0 : i32, i32
  }
  func.func @transform_2(%arg0: i32, %arg1: i32) -> (i32, i32) {
    %c0_i32 = arith.constant 0 : i32
    %c0_i32_0 = arith.constant 0 : i32
    %c0_i32_1 = arith.constant 0 : i32
    return %c0_i32, %c0_i32_0 : i32, i32
  }
  func.func @transform_3(%arg0: i32, %arg1: i32) -> (i32, i32) {
    %c0_i32 = arith.constant 0 : i32
    %c0_i32_0 = arith.constant 0 : i32
    %c0_i32_1 = arith.constant 0 : i32
    return %c0_i32, %c0_i32_0 : i32, i32
  }
  func.func @transform_4(%arg0: i32, %arg1: i32) -> (i32, i32) {
    %c0_i32 = arith.constant 0 : i32
    %c0_i32_0 = arith.constant 0 : i32
    %c0_i32_1 = arith.constant 0 : i32
    return %c0_i32, %c0_i32_0 : i32, i32
  }
  func.func @transform_5(%arg0: i32, %arg1: i32) -> (i32, i32, i32) {
    %c0_i32 = arith.constant 0 : i32
    %c0_i32_0 = arith.constant 0 : i32
    return %arg0, %c0_i32, %arg1 : i32, i32, i32
  }
}

</mosaic_0001>

<bundles_post_ra>
// kernel: tpu_custom_call.1
= control target key start
LH: loop header
LB: loop body
LE: loop exit
PB: predicated region body
PF: predicated region fallthrough
CT: control target
= control target key end

     0   :  { %10 = vsyncpa [#allocation3], 0  ;;  %s1114_s0 = inlined_call_operand.vmem [shape: bf16[2,36,256], index: 0, kind: input, shape index: {}]   ;;  %s1115_s1 = inlined_call_operand.vmem [shape: bf16[96,36], index: 1, kind: input, shape index: {}]   ;;  %s1116_s2 = inlined_call_operand.vmem [shape: f32[96,1], index: 2, kind: input, shape index: {}]   ;;  %s1117_s3 = inlined_call_operand.vmem [shape: bf16[8,96], index: 3, kind: input, shape index: {}]   ;;  %s1118_s4 = inlined_call_operand.vmem [shape: f32[8,1], index: 4, kind: input, shape index: {}]   ;;  %s1119_s5 = inlined_call_operand.hbm [shape: f32[2,8,256], index: 5, kind: output, shape index: {}]  }
   0x1   :  { %12 = vsyncpa [#allocation3 + $0x1], 0  ;;  %s927_s18 = smov 0   ;;  %s929_s19 = smov 0  }
   0x2   :  { %s931_s20 = smov 0   ;;  %s933_s21 = smov 0  }
   0x3   :  { %s935_s22 = smov 0   ;;  %s937_s23 = smov 0  }
   0x4 LB: > { %s673_s24 = sadd.s32 4294967295, %s894_s23   ;;  %s674_s25 = sadd.s32 4294967294, %s894_s23   ;;  %s894_s23 = sphi %s937_s23, %s18_s23   ;;  %s890_s22 = sphi %s935_s22, %s1126_s22   ;;  %s886_s21 = sphi %s933_s21, %s1125_s21   ;;  %s882_s20 = sphi %s931_s20, %s1124_s20   ;;  %s878_s19 = sphi %s929_s19, %s1123_s19   ;;  %s874_s18 = sphi %s927_s18, %s1122_s18  }
   0x5   : > { %s30_s26 = sadd.s32 1, %s890_s22  ;;  %s151_s27 = sadd.s32 1, %s882_s20 }
   0x6   : > { %p32_p0 = scmp.ge.s32.totalorder %s30_s26, 2  ;;  %p161_p1 = scmp.ne.s32.totalorder %s882_s20, %s878_s19 }
   0x7   : > { %p162_p2 = scmp.eq.s32.totalorder %s673_s24, 1  ;;  %p167_p3 = scmp.ne.s32.totalorder %s878_s19, %s874_s18 }
   0x8   : > { %s1128_s26 = smov (%p32_p0, %s30_s26), 0  ;;  %p168_p5 = scmp.eq.s32.totalorder %s674_s25, 1 }
   0x9   : > { %p967_p4 = por %p162_p2, %p161_p1  ;;  %s146_s29 = ssub.s32 %s890_s22, %s1128_s26 }
   0xa   : > { %p677_p6 = scmp.ge.s32.totalorder %s894_s23, 1  ;;  %p149_p7 = scmp.eq.s32.totalorder %s146_s29, 0 }
   0xb   : > { %p974_p8 = por %p168_p5, %p167_p3  ;;  %p211_p9 = scmp.lt.s32.totalorder %s894_s23, 3 }
   0xc   : > { %s980_s6 = scalar_select %p149_p7, %s882_s20, %s151_s27  }
   0xd   : > { %p212_p10 = pnand %p677_p6, %p211_p9 }
   0xe   : > { %p244_p11 = scmp.lt.s32.totalorder (!%p212_p10), %s886_s21, 1  ;;  %s240_s7 = sand.u32 (!%p212_p10), 1, %s878_s19  }
   0xf   : > { %215 = sbr.rel (%p212_p10) target bundleno = 386 (0x182), region = 40  ;;  %s749_s8 = sshll.u32 (!%p212_p10), %s886_s21, 4 }
  0x10   : > { %s678_s9 = sshll.u32 (!%p212_p10), %s240_s7, 4  ;;  %s579_s16 = scalar_lea.sflag (!%p212_p10), [#allocation3], %s240_s7 }
  0x11   : > { %s242_s13 = scalar_lea.vmem (!%p212_p10), [#allocation2], %s678_s9  ;;  %s836_s27 = scalar_lea.hbm (!%p212_p10), %s1119_s5, 32 }
  0x12   : > { %s594_s14 = sshll.u32 (!%p212_p10), %s242_s13, 4  ;;  %s595_s14 = int_to_ptr.vmem [resolvable:$true] %s594_s14 }
  0x14   : > { %v280_v0 = vld [vmem:[%s1116_s2 + $0x40] sm:$0xff]  ;;  %v896_v1 = vmov 0   ;;  %v282_v2 = vld [vmem:[%s1116_s2 + $0x50] sm:$0xff]  ;;  %s245_s11 = scalar_select %p244_p11, %s886_s21, 1  ;;  %v281_v4 = vld [vmem:[%s1116_s2 + $0x48] sm:$0xff]  ;;  %vm418_vm0 = vcmask 1041408  }
  0x15   : > { %814 = vset.pattern.permute.xlu1 %v896_v1  ;;  %813 = vset.pattern.permute.xlu0 %v896_v1  ;;  %v283_v11 = vld [vmem:[%s1116_s2 + $0x58] sm:$0xff]  ;;  %v278_v12 = vld [vmem:[%s1116_s2 + $0x30] sm:$0xff]  ;;  %v277_v23 = vld [vmem:[%s1116_s2 + $0x28] sm:$0xff]  ;;  %vm399_vm1 = vcmask 293888   ;;  %vm546_vm2 = vcmask 785408  }
  0x16   : > { %326 = vperm.xlu1 %814, %v280_v0   ;;  %336 = vperm.xlu0 %813, %v282_v2   ;;  %s756_s12 = smul.u32 40, %s245_s11  ;;  %v279_v24 = vld [vmem:[%s1116_s2 + $0x38] sm:$0xff]  ;;  %v276_v26 = vld [vmem:[%s1116_s2 + $0x20] sm:$0xff]  ;;  %v274_v32 = vld [vmem:[%s1116_s2 + $0x10] sm:$0xff] }
  0x17   : > { %815 = vset.pattern.permute.xlu2 %v896_v1  ;;  %v743_v28 = vld [vmem:[%s1115_s1] sm:$0xff]  ;;  %v275_v31 = vld [vmem:[%s1116_s2 + $0x18] sm:$0xff]  ;;  %v273_v33 = vld [vmem:[%s1116_s2 + $0x8] sm:$0xff] }
  0x18   : > { %s251_s15 = scalar_lea.vmem %s1114_s0, %s756_s12  ;;  %316 = vperm.xlu2 %815, %v278_v12   ;;  %v747_v29 = vld [vmem:[%s1115_s1 + $0x20] sm:$0xff]  ;;  %v744_v35 = vld [vmem:[%s1115_s1 + $0x8] sm:$0xff]  ;;  %v745_v37 = vld [vmem:[%s1115_s1 + $0x10] sm:$0xff]  ;;  %s592_s12 = scalar_lea.hbm %s1119_s5, %s749_s8 }
  0x19   : > { %v259_v3 = vld [vmem:[%s251_s15 + $0x20] sm:$0x33]  ;;  %v714_v7 = vld [vmem:[%s251_s15 + $0x10] sm:$0xf]  ;;  %v742_v10 = vld [vmem:[%s251_s15 + $0x14] sm:$0xf0] }
  0x1a   : > { %v387_v5 = vunpack.c.l.b16 %v259_v3  ;;  %v388_v6 = vunpack.c.h.b16 %v259_v3  ;;  %v741_v13 = vld [vmem:[%s251_s15 + $0x14] sm:$0xf]  ;;  %v716_v14 = vld [vmem:[%s251_s15 + $0x18] sm:$0xf0]  ;;  %v715_v17 = vor.u32 %v742_v10, %v714_v7  ;;  %v706_v19 = vld [vmem:[%s251_s15] sm:$0xf] }
  0x1b   : > { %v719_v18 = vor.u32 %v741_v13, %v716_v14  ;;  %v740_v20 = vld [vmem:[%s251_s15 + $0x4] sm:$0xf0]  ;;  %v739_v21 = vld [vmem:[%s251_s15 + $0x4] sm:$0xf]  ;;  %v708_v22 = vld [vmem:[%s251_s15 + $0x8] sm:$0xf0] }
  0x1c   : > { %v393_v8 = vpack.c.b16 %v387_v5, %v387_v5  ;;  %v394_v9 = vpack.c.b16 %v388_v6, %v388_v6  ;;  %v707_v25 = vor.u32 %v740_v20, %v706_v19  ;;  %v711_v27 = vor.u32 %v739_v21, %v708_v22  ;;  %v272_v30 = vld [vmem:[%s1116_s2] sm:$0xff]  ;;  %v748_v36 = vld [vmem:[%s1115_s1 + $0x28] sm:$0xff]  ;;  %v746_v38 = vld [vmem:[%s1115_s1 + $0x18] sm:$0xff]  ;;  %s596_s15 = sshll.u32 %s592_s12, 4  ;;  %s597_s15 = int_to_ptr.hbm [resolvable:$true] %s596_s15 }
  0x1d   : > { %v540_v34 = vld [vmem:[%s1118_s4] sm:$0xff]  ;;  %s830_s21 = sshra.s32 %s597_s15, 4  ;;  %s831_s21 = int_to_ptr.hbm [resolvable:$true] %s830_s21 }
  0x1e   : > { %331 = vperm.xlu1 %814, %v281_v4   ;;  %341 = vperm.xlu0 %813, %v283_v11   ;;  %v420_v15 = vsel %vm418_vm0, %v393_v8, 0  ;;  %v423_v16 = vsel %vm418_vm0, %v394_v9, 0  ;;  %s832_s17 = scalar_lea.hbm %s831_s21, 16  ;;  %p837_p1 = scmp.lt.s32.totalorder %s831_s21, %s1119_s5 }
  0x1f   : > { %430 = vmatpush.bf16.msra.mxu0 %v420_v15  ;;  %750 = vmatpush.bf16.msra.mxu2 %v420_v15  ;;  %p833_p12 = scmp.ne.s32.totalorder %s831_s21, %s832_s17  ;;  %p838_p2 = scmp.lt.s32.totalorder %s836_s27, %s832_s17 }
  0x20   : > { %469 = vmatpush.bf16.msra.mxu1 %v423_v16  ;;  %753 = vmatpush.bf16.msra.mxu3 %v423_v16 }
  0x21   : > { %321 = vperm.xlu2 %815, %v279_v24   ;;  %p834_p13 = pnand %p833_p12, %p967_p4  ;;  %p839_p3 = por %p838_p2, %p837_p1 }
  0x23   : > { %431 = vmatpush.bf16.msra.mxu0 %v715_v17  ;;  %751 = vmatpush.bf16.msra.mxu2 %v715_v17  ;;  %p835_p0 = pneg %p834_p13 }
  0x24   : > { %470 = vmatpush.bf16.msra.mxu1 %v719_v18  ;;  %754 = vmatpush.bf16.msra.mxu3 %v719_v18 }
  0x25   : > { %p840_p5 = pnand %p839_p3, %p835_p0 }
  0x26   : > { %311 = vperm.xlu1 %814, %v277_v23   ;;  %306 = vperm.xlu0 %813, %v276_v26  }
  0x27   : > { %432 = vmatpush.bf16.msra.mxu0 %v707_v25  ;;  %752 = vmatpush.bf16.msra.mxu2 %v707_v25 }
  0x28   : > { %471 = vmatpush.bf16.msra.mxu1 %v711_v27  ;;  %755 = vmatpush.bf16.msra.mxu3 %v711_v27 }
  0x29   : > { %296 = vperm.xlu2 %815, %v274_v32  }
  0x2a   : > { %720 = vmatmul.msk.bf16.vlgmr.msra.gmra.mxu0 %vm399_vm1, %v743_v28  ;;  %724 = vmatmul.msk.bf16.vlgmr.msra.gmra.mxu2 %vm399_vm1, %v747_v29 }
  0x2b   : > { %726 = vmatmul.msk.bf16.vlgmr.msra.gmra.mxu1 %vm399_vm1, %v743_v28  ;;  %730 = vmatmul.msk.bf16.vlgmr.msra.gmra.mxu3 %vm399_vm1, %v747_v29 }
  0x2e   : > { %286 = vperm.xlu1 %814, %v272_v30   ;;  %301 = vperm.xlu0 %813, %v275_v31  }
  0x31   : > { %291 = vperm.xlu2 %815, %v273_v33  }
  0x36   : > { %543 = vperm.xlu0 %813, %v540_v34  }
  0x3a   : > { %721 = vmatmul.msk.bf16.gmra.mxu0 %vm399_vm1, %v744_v35  ;;  %725 = vmatmul.msk.bf16.gmra.mxu2 %vm399_vm1, %v748_v36 }
  0x3b   : > { %727 = vmatmul.msk.bf16.gmra.mxu1 %vm399_vm1, %v744_v35  ;;  %731 = vmatmul.msk.bf16.gmra.mxu3 %vm399_vm1, %v748_v36 }
  0x4a   : > { %722 = vmatmul.msk.bf16.gmra.mxu0 %vm399_vm1, %v745_v37 }
  0x4b   : > { %728 = vmatmul.msk.bf16.gmra.mxu1 %vm399_vm1, %v745_v37 }
  0x5a   : > { %723 = vmatmul.msk.bf16.gmra.mxu0 %vm399_vm1, %v746_v38 }
  0x5b   : > { %729 = vmatmul.msk.bf16.gmra.mxu1 %vm399_vm1, %v746_v38 }
  0x72   : > { %v317_v1 = vpop.permute.xlu2 %316 }
  0x7b   : > { %v322_v20 = vpop.permute.xlu2 %321 }
  0x83   : > { %v297_v24 = vpop.permute.xlu2 %296 }
  0x88   : > { %v327_v49 = vpop.permute.xlu1 %326  ;;  %v337_v50 = vpop.permute.xlu0 %336 }
  0x90   : > { %v332_v57 = vpop.permute.xlu1 %331  ;;  %v342_v58 = vpop.permute.xlu0 %341 }
  0x98   : > { %v307_v21 = vpop.permute.xlu0 %306  ;;  %v312_v25 = vpop.permute.xlu1 %311 }
  0xa0   : > { %v302_v32 = vpop.permute.xlu0 %301 }
  0xa7   : > { %v1056_v39 = vpop.f32.mrf.mxu0 }
  0xa8   : > { %v1058_v40 = vpop.f32.mrf.mxu1 }
  0xad   : > { %v454_v41 = vpop.f32.mrf.mxu2 }
  0xae   : > { %v493_v42 = vpop.f32.mrf.mxu3  ;;  %v455_v60 = vadd.f32 %v454_v41, %v327_v49 }
  0xaf   : > { %v1060_v43 = vpop.f32.mrf.mxu0  ;;  %v494_v2 = vadd.f32 %v493_v42, %v327_v49 }
  0xb0   : > { %v1062_v44 = vpop.f32.mrf.mxu1  ;;  %v519_v10 = vmax.f32 %v455_v60, 0.0 }
  0xb1   : > { %v520_v13 = vmax.f32 %v494_v2, 0.0 }
  0xb5   : > { %v456_v45 = vpop.f32.mrf.mxu2 }
  0xb6   : > { %v495_v46 = vpop.f32.mrf.mxu3  ;;  %v457_v61 = vadd.f32 %v456_v45, %v332_v57 }
  0xb7   : > { %v1064_v47 = vpop.f32.mrf.mxu0  ;;  %v496_v3 = vadd.f32 %v495_v46, %v332_v57 }
  0xb8   : > { %v1066_v48 = vpop.f32.mrf.mxu1  ;;  %v521_v11 = vmax.f32 %v457_v61, 0.0 }
  0xb9   : > { %v522_v14 = vmax.f32 %v496_v3, 0.0 }
  0xba   : > { %v536_v16 = vpack.c.bf16 %v521_v11, %v519_v10 }
  0xbb   : > { %v537_v18 = vpack.c.bf16 %v522_v14, %v520_v13 }
  0xbd   : > { %v459_v51 = vpop.f32.mrf.mxu2 }
  0xbe   : > { %v498_v52 = vpop.f32.mrf.mxu3  ;;  %v460_v55 = vadd.f32 %v459_v51, %v337_v50 }
  0xbf   : > { %v441_v53 = vpop.f32.mrf.mxu0  ;;  %v499_v56 = vadd.f32 %v498_v52, %v337_v50  ;;  %v292_v50 = vpop.permute.xlu2 %291 }
  0xc0   : > { %v480_v54 = vpop.f32.mrf.mxu1  ;;  %v523_v62 = vmax.f32 %v460_v55, 0.0  ;;  %v442_v45 = vadd.f32 %v441_v53, %v302_v32  ;;  %v437_v61 = vadd.f32 %v1060_v43, %v292_v50  ;;  %v476_v53 = vadd.f32 %v1062_v44, %v292_v50 }
  0xc1   : > { %v524_v4 = vmax.f32 %v499_v56, 0.0  ;;  %v481_v51 = vadd.f32 %v480_v54, %v302_v32  ;;  %v440_v56 = vadd.f32 %v1064_v47, %v297_v24 }
  0xc3   : > { %v507_v2 = vmax.f32 %v440_v56, 0.0 }
  0xc5   : > { %v461_v59 = vpop.f32.mrf.mxu2 }
  0xc6   : > { %v462_v63 = vadd.f32 %v461_v59, %v342_v58  ;;  %v500_v0 = vpop.f32.mrf.mxu3  ;;  %v479_v59 = vadd.f32 %v1066_v48, %v297_v24 }
  0xc7   : > { %v501_v5 = vadd.f32 %v500_v0, %v342_v58  ;;  %v444_v6 = vpop.f32.mrf.mxu0  ;;  %v287_v58 = vpop.permute.xlu1 %286  ;;  %v510_v0 = vmax.f32 %v481_v51, 0.0 }
  0xc8   : > { %v525_v7 = vmax.f32 %v462_v63, 0.0  ;;  %v483_v8 = vpop.f32.mrf.mxu1  ;;  %v445_v35 = vadd.f32 %v444_v6, %v307_v21  ;;  %v435_v54 = vadd.f32 %v1056_v39, %v287_v58  ;;  %v474_v47 = vadd.f32 %v1058_v40, %v287_v58  ;;  %v527_v39 = vld [vmem:[%s1117_s3] sm:$0xf]  ;;  %v544_v40 = vpop.permute.xlu0 %543 }
  0xc9   : > { %v526_v9 = vmax.f32 %v501_v5, 0.0  ;;  %v484_v38 = vadd.f32 %v483_v8, %v307_v21  ;;  %v508_v3 = vmax.f32 %v479_v59, 0.0  ;;  %v506_v5 = vmax.f32 %v476_v53, 0.0 }
  0xca   : > { %v538_v12 = vpack.c.bf16 %v525_v7, %v523_v62  ;;  %v511_v57 = vmax.f32 %v445_v35, 0.0  ;;  %v509_v62 = vmax.f32 %v442_v45, 0.0  ;;  %v503_v6 = vmax.f32 %v435_v54, 0.0 }
  0xcb   : > { %v539_v15 = vpack.c.bf16 %v526_v9, %v524_v4  ;;  %v512_v60 = vmax.f32 %v484_v38, 0.0  ;;  %v505_v4 = vmax.f32 %v437_v61, 0.0  ;;  %v531_v43 = vpack.c.bf16 %v510_v0, %v508_v3 }
  0xcc   : > { %552 = vmatpush.bf16.msrb.mxu2 %v538_v12  ;;  %v530_v48 = vpack.c.bf16 %v509_v62, %v507_v2  ;;  %v504_v7 = vmax.f32 %v474_v47, 0.0 }
  0xcd   : > { %565 = vmatpush.bf16.msrb.mxu3 %v539_v15  ;;  %v528_v44 = vpack.c.bf16 %v505_v4, %v503_v6 }
  0xce   : > { %v529_v8 = vpack.c.bf16 %v506_v5, %v504_v7 }
  0xcf   : > { %v446_v17 = vpop.f32.mrf.mxu0 }
  0xd0   : > { %v485_v19 = vpop.f32.mrf.mxu1  ;;  %553 = vmatpush.bf16.msrb.mxu2 %v536_v16  ;;  %v447_v29 = vadd.f32 %v446_v17, %v312_v25 }
  0xd1   : > { %566 = vmatpush.bf16.msrb.mxu3 %v537_v18  ;;  %v486_v33 = vadd.f32 %v485_v19, %v312_v25 }
  0xd2   : > { %v513_v46 = vmax.f32 %v447_v29, 0.0 }
  0xd3   : > { %v514_v52 = vmax.f32 %v486_v33, 0.0 }
  0xd4   : > { %v532_v63 = vpack.c.bf16 %v513_v46, %v511_v57 }
  0xd7   : > { %v449_v22 = vpop.f32.mrf.mxu0 }
  0xd8   : > { %v488_v23 = vpop.f32.mrf.mxu1  ;;  %v450_v26 = vadd.f32 %v449_v22, %v317_v1 }
  0xd9   : > { %v489_v27 = vadd.f32 %v488_v23, %v317_v1  ;;  %v533_v1 = vpack.c.bf16 %v514_v52, %v512_v60 }
  0xda   : > { %v515_v36 = vmax.f32 %v450_v26, 0.0 }
  0xdb   : > { %v516_v41 = vmax.f32 %v489_v27, 0.0 }
  0xdf   : > { %v451_v28 = vpop.f32.mrf.mxu0 }
  0xe0   : > { %v452_v30 = vadd.f32 %v451_v28, %v322_v20  ;;  %v490_v31 = vpop.f32.mrf.mxu1 }
  0xe1   : > { %v491_v34 = vadd.f32 %v490_v31, %v322_v20 }
  0xe2   : > { %v517_v37 = vmax.f32 %v452_v30, 0.0 }
  0xe3   : > { %v518_v42 = vmax.f32 %v491_v34, 0.0 }
  0xe4   : > { %v534_v49 = vpack.c.bf16 %v517_v37, %v515_v36 }
  0xe5   : > { %v535_v55 = vpack.c.bf16 %v518_v42, %v516_v41 }
  0xe6   : > { %554 = vmatpush.bf16.msrb.mxu2 %v534_v49 }
  0xe7   : > { %567 = vmatpush.bf16.msrb.mxu3 %v535_v55 }
  0xea   : > { %555 = vmatpush.bf16.msrb.mxu2 %v532_v63 }
  0xeb   : > { %568 = vmatpush.bf16.msrb.mxu3 %v533_v1 }
  0xee   : > { %556 = vmatpush.bf16.msrb.mxu2 %v530_v48 }
  0xef   : > { %569 = vmatpush.bf16.msrb.mxu3 %v531_v43 }
  0xf2   : > { %557 = vmatpush.bf16.msrb.mxu2 %v528_v44 }
  0xf3   : > { %570 = vmatpush.bf16.msrb.mxu3 %v529_v8 }
  0xf5   : > { %732 = vmatmul.msk.bf16.vlgmr.msrb.gmra.mxu2 %vm546_vm2, %v527_v39 }
  0xf6   : > { %733 = vmatmul.msk.bf16.vlgmr.msrb.gmra.mxu3 %vm546_vm2, %v527_v39 }
 0x178   : > { %v559_v9 = vpop.f32.mrf.mxu2 }
 0x179   : > { %v560_v10 = vadd.f32 %v559_v9, %v544_v40  ;;  %v572_v11 = vpop.f32.mrf.mxu3 }
 0x17a   : > { %v573_v12 = vadd.f32 %v572_v11, %v544_v40 }
 0x17b   : > { %576 = vst [vmem:[%s242_s13] sm:$0xff] %v560_v10 }
 0x17c   : > { %577 = vst [vmem:[%s242_s13 + $0x8] sm:$0xff] %v573_v12 }
 0x17d   : > { %843 = shalt.err (!%p840_p5)
}
 0x17e   : > { %757 = dma.vmem_to_hbm [thread:$0]  (%p967_p4), %s595_s14, 256, %s597_s15, %s579_s16  }
 0x180   : > { %v561_v13 = vpop.f32.mrf.mxu2 }
 0x181   : > { %v574_v14 = vpop.f32.mrf.mxu3 }
 0x182 PF: > { %p763_p6 = scmp.ge.s32.totalorder %s894_s23, 2  ;;  %s608_s7 = sand.u32 1, %s874_s18  }
 0x183   : > { %s609_s9 = scalar_lea.sflag [#allocation3], %s608_s7 }
 0x184   : > { %p760_p7 = pnand %p763_p6, %p974_p8 }
 0x186   : > { %p761_p9 = pneg %p760_p7 }
 0x188   : > { %869 = dma.done.wait (%p761_p9), %s609_s9, 256  }
 0x189   : > { %871 = vsyncadd (%p761_p9), %s609_s9, 4294967040  ;;  %s18_s23 = sadd.s32 1, %s894_s23   ;;  %s1122_s18 = smov %s878_s19 }
 0x18a   : > { %p15_p10 = scmp.ge.s32.totalorder %s18_s23, 4   ;;  %s1123_s19 = smov %s882_s20 }
 0x18b   : > { %s1124_s20 = smov %s980_s6  ;;  %s1125_s21 = smov %s890_s22 }
 0x18c   : > { %s1126_s22 = smov %s1128_s26  ;;  %17 = sbr.rel (!%p15_p10) target bundleno = 4 (0x4), region = 75 }
 0x191   :  { %615 = vsyncpa [#allocation3], 1 }
 0x192   :  { %617 = vsyncpa [#allocation3 + $0x1], 1 }

</bundles_post_ra>
